<compile_context>
chip_gen: v7x
topology: tpu7x:2x2x1
jax: 0.10.0
libtpu: 0.0.40
codegen_flags: <defaults>
</compile_context>

<pallas_src>
import jax
import jax.numpy as jnp
from jax.experimental import pallas as pl
from jax.experimental.pallas import tpu as pltpu

LANE = 128
MAX_TILE_ROWS = 2048  # (2048, 128) f32 tile = 1 MiB per input per pipeline buffer


def _round_up(x, m):
    return -(-x // m) * m


def _to_rows128(x):
    """Flatten row-major to (rows, 128); zero-pad the tail only if numel % 128 != 0."""
    flat = x.reshape(-1)
    n = flat.shape[0]
    n_pad = _round_up(n, LANE)
    if n_pad != n:
        flat = jnp.pad(flat, (0, n_pad - n))
    return flat.reshape(n_pad // LANE, LANE)


def _make_sl1_kernel(n, tile_rows, mask_mode):
    """mask_mode: 'gt' (mask = gt > 0), 'all' (every element), 'external' (int32 mask input)."""
    block_elems = tile_rows * LANE
    needs_valid = (n % block_elems) != 0  # partial last block and/or padded tail exists

    def _step(pred_ref, gt_ref, mask_ref, out_ref, acc_sum_ref, acc_cnt_ref):
        i = pl.program_id(0)

        @pl.when(i == 0)
        def _():
            acc_sum_ref[...] = jnp.zeros_like(acc_sum_ref)
            acc_cnt_ref[...] = jnp.zeros_like(acc_cnt_ref)

        pred = pred_ref[...].astype(jnp.float32)
        gt = gt_ref[...].astype(jnp.float32)

        # Content mask (computed in-kernel for the default path -> no extra HBM stream).
        if mask_mode == "gt":
            m = gt > 0.0
        elif mask_mode == "external":
            m = mask_ref[...] != 0
        else:  # "all"
            m = None

        # Tail-validity mask: excludes zero-padded remainder of the last row and the
        # uninitialized rows of a partial final block (stale VMEM must not be selected).
        if needs_valid:
            row_idx = i * tile_rows + jax.lax.broadcasted_iota(
                jnp.int32, (tile_rows, LANE), 0)
            col_idx = jax.lax.broadcasted_iota(jnp.int32, (tile_rows, LANE), 1)
            valid = row_idx * LANE + col_idx < n
            m = valid if m is None else jnp.logical_and(m, valid)

        # SmoothL1 (beta = 1.0, PyTorch default): 0.5*d^2 if |d| < 1 else |d| - 0.5
        diff = pred - gt
        ad = jnp.abs(diff)
        per = jnp.where(ad < 1.0, 0.5 * diff * diff, ad - 0.5)

        if m is None:
            acc_sum_ref[...] += per
            acc_cnt_ref[...] += 1.0
        else:
            acc_sum_ref[...] += jnp.where(m, per, 0.0)   # where() keeps NaN/garbage out
            acc_cnt_ref[...] += jnp.where(m, 1.0, 0.0)

        @pl.when(i == pl.num_programs(0) - 1)
        def _():
            # Single cross-lane/sublane reduce at the end. Empty mask -> NaN,
            # matching PyTorch's mean-over-empty behavior.
            out_ref[0, 0] = jnp.sum(acc_sum_ref[...]) / jnp.sum(acc_cnt_ref[...])

    if mask_mode == "external":
        def kernel(pred_ref, gt_ref, mask_ref, out_ref, acc_sum_ref, acc_cnt_ref):
            _step(pred_ref, gt_ref, mask_ref, out_ref, acc_sum_ref, acc_cnt_ref)
    else:
        def kernel(pred_ref, gt_ref, out_ref, acc_sum_ref, acc_cnt_ref):
            _step(pred_ref, gt_ref, None, out_ref, acc_sum_ref, acc_cnt_ref)
    return kernel


def sl1_loss(depth_pred, depth_gt, mask=None, useMask=True):
    """JAX/Pallas equivalent of SL1Loss.forward."""
    if mask is None:
        mask_mode = "gt" if useMask else "all"
    else:
        mask_mode = "external"

    pred2 = _to_rows128(depth_pred)
    gt2 = _to_rows128(depth_gt)
    n = int(depth_gt.size)
    rows = pred2.shape[0]
    # Round the tile row count to 32 so the block is layout-safe for any input dtype
    # (f32/bf16/int8 sublane packing); partial blocks are handled by the validity mask.
    tile_rows = min(MAX_TILE_ROWS, _round_up(rows, 32))
    grid = (pl.cdiv(rows, tile_rows),)

    operands = [pred2, gt2]
    in_specs = [
        pl.BlockSpec((tile_rows, LANE), lambda i: (i, 0)),
        pl.BlockSpec((tile_rows, LANE), lambda i: (i, 0)),
    ]
    if mask_mode == "external":
        # int32 (never f32): nonzero values are thresholded, not used as weights.
        mask2 = _to_rows128((mask != 0).astype(jnp.int32))
        operands.append(mask2)
        in_specs.append(pl.BlockSpec((tile_rows, LANE), lambda i: (i, 0)))

    out = pl.pallas_call(
        _make_sl1_kernel(n, tile_rows, mask_mode),
        out_shape=jax.ShapeDtypeStruct((1, 1), jnp.float32),
        grid_spec=pltpu.PrefetchScalarGridSpec(
            num_scalar_prefetch=0,
            grid=grid,
            in_specs=in_specs,
            out_specs=pl.BlockSpec(memory_space=pltpu.SMEM),
            scratch_shapes=[
                pltpu.VMEM((tile_rows, LANE), jnp.float32),  # masked smooth-L1 partial sums
                pltpu.VMEM((tile_rows, LANE), jnp.float32),  # masked element counts
            ],
        ),
        compiler_params=pltpu.CompilerParams(
            dimension_semantics=("arbitrary",),  # running reduction across the grid
        ),
    )(*operands)
    return out[0, 0]


def _reference(depth_pred, depth_gt, mask=None, useMask=True):
    if mask is None and useMask:
        mask = depth_gt > 0
    if mask is None:
        mask = jnp.ones(depth_gt.shape, dtype=bool)
    mask = mask != 0
    diff = (depth_pred - depth_gt).astype(jnp.float32)
    ad = jnp.abs(diff)
    per = jnp.where(ad < 1.0, 0.5 * diff * diff, ad - 0.5)
    per = jnp.where(mask, per, 0.0)
    return jnp.sum(per) / jnp.sum(mask.astype(jnp.float32))


def _check(got, want, rtol):
    assert jnp.allclose(got, want, rtol=rtol, atol=1e-6), (got, want)


if __name__ == "__main__":
    key = jax.random.PRNGKey(0)
    k1, k2, k3, k4 = jax.random.split(key, 4)

    # 1) Small depth maps, default path (mask = gt > 0 computed in-kernel), partial block.
    B, H, W = 2, 16, 16
    depth_pred = jax.random.normal(k1, (B, H, W), dtype=jnp.float32) * 2.0 + 1.0
    gt_raw = jax.random.normal(k2, (B, H, W), dtype=jnp.float32) * 2.0 + 0.5
    depth_gt = jnp.where(gt_raw > 0.3, gt_raw, 0.0)  # non-trivial mask

    loss = sl1_loss(depth_pred, depth_gt)
    jax.block_until_ready(loss)
    _check(loss, _reference(depth_pred, depth_gt), rtol=1e-5)

    # 2) Typical depth-map size -> multi-step grid (accumulation across blocks) + tail masking.
    B2, H2, W2 = 2, 360, 480
    pred_big = jax.random.normal(k3, (B2, H2, W2), dtype=jnp.float32) * 2.0 + 1.0
    gt_big_raw = jax.random.normal(k4, (B2, H2, W2), dtype=jnp.float32) * 2.0 + 0.5
    gt_big = jnp.where(gt_big_raw > 0.3, gt_big_raw, 0.0)

    loss_big = sl1_loss(pred_big, gt_big)
    jax.block_until_ready(loss_big)
    _check(loss_big, _reference(pred_big, gt_big), rtol=1e-4)

    # 3) Explicit mask path (int32 mask stream).
    ext_mask = gt_raw > 0.5
    loss_m = sl1_loss(depth_pred, depth_gt, mask=ext_mask)
    jax.block_until_ready(loss_m)
    _check(loss_m, _reference(depth_pred, depth_gt, mask=ext_mask), rtol=1e-5)

    print("KERNEL_OK")
</pallas_src>

<mosaic_0001>
module attributes {stable_mosaic.version = 11 : i64} {
  func.func @kernel(%arg0: i32, %arg1: memref<32x128xf32, #tpu.memory_space<vmem>>, %arg2: memref<32x128xf32, #tpu.memory_space<vmem>>, %arg3: memref<1x1xf32, #tpu.memory_space<smem>>, %arg4: memref<32x128xf32, #tpu.memory_space<vmem>>, %arg5: memref<32x128xf32, #tpu.memory_space<vmem>>) attributes {dimension_semantics = [#tpu.dimension_semantics<arbitrary>], iteration_bounds = array<i64: 1>, scalar_prefetch = 0 : i64, scratch_operands = 2 : i64, tpu.core_type = #tpu.core_type<tc>, window_params = [{transform_indices = @transform_0, window_bounds = array<i64: 32, 128>}, {transform_indices = @transform_1, window_bounds = array<i64: 32, 128>}, {transform_indices = @transform_2, window_bounds = array<i64: 1, 1>}]} {
    %c0_i32 = arith.constant 0 : i32
    %0 = arith.cmpi eq, %arg0, %c0_i32 : i32
    %1 = arith.extui %0 : i1 to i32
    %c0_i32_0 = arith.constant 0 : i32
    %2 = arith.cmpi ne, %1, %c0_i32_0 : i32
    scf.if %2 {
      %cst_20 = arith.constant 0.000000e+00 : f32
      %42 = vector.broadcast %cst_20 : f32 to vector<32x128xf32>
      %c0_21 = arith.constant 0 : index
      %c0_22 = arith.constant 0 : index
      %43 = vector.load %arg4[%c0_21, %c0_22] : memref<32x128xf32, #tpu.memory_space<vmem>>, vector<32x128xf32>
      tpu.vector_store %arg4[%c0_21, %c0_22], %42 {strides = array<i32>} : memref<32x128xf32, #tpu.memory_space<vmem>>, vector<32x128xf32>,
      %cst_23 = arith.constant 0.000000e+00 : f32
      %44 = vector.broadcast %cst_23 : f32 to vector<32x128xf32>
      %c0_24 = arith.constant 0 : index
      %c0_25 = arith.constant 0 : index
      %45 = vector.load %arg5[%c0_24, %c0_25] : memref<32x128xf32, #tpu.memory_space<vmem>>, vector<32x128xf32>
      tpu.vector_store %arg5[%c0_24, %c0_25], %44 {strides = array<i32>} : memref<32x128xf32, #tpu.memory_space<vmem>>, vector<32x128xf32>,
    } else {
    }
    %c0 = arith.constant 0 : index
    %c0_1 = arith.constant 0 : index
    %3 = vector.load %arg1[%c0, %c0_1] : memref<32x128xf32, #tpu.memory_space<vmem>>, vector<32x128xf32>
    %c0_2 = arith.constant 0 : index
    %c0_3 = arith.constant 0 : index
    %4 = vector.load %arg2[%c0_2, %c0_3] : memref<32x128xf32, #tpu.memory_space<vmem>>, vector<32x128xf32>
    %cst = arith.constant 0.000000e+00 : f32
    %5 = vector.broadcast %cst : f32 to vector<32x128xf32>
    %6 = arith.cmpf ogt, %4, %5 : vector<32x128xf32>
    %c32_i32 = arith.constant 32 : i32
    %7 = arith.muli %arg0, %c32_i32 : i32
    %8 = tpu.iota {dimensions = array<i32: 0>} : vector<32x128xi32>
    %9 = vector.broadcast %7 : i32 to vector<32x128xi32>
    %10 = arith.addi %9, %8 : vector<32x128xi32>
    %11 = tpu.iota {dimensions = array<i32: 1>} : vector<32x128xi32>
    %c128_i32 = arith.constant 128 : i32
    %12 = vector.broadcast %c128_i32 : i32 to vector<32x128xi32>
    %13 = arith.muli %10, %12 : vector<32x128xi32>
    %14 = arith.addi %13, %11 : vector<32x128xi32>
    %c512_i32 = arith.constant 512 : i32
    %15 = vector.broadcast %c512_i32 : i32 to vector<32x128xi32>
    %16 = arith.cmpi slt, %14, %15 : vector<32x128xi32>
    %17 = arith.andi %6, %16 : vector<32x128xi1>
    %18 = arith.subf %3, %4 : vector<32x128xf32>
    %19 = math.absf %18 : vector<32x128xf32>
    %cst_4 = arith.constant 1.000000e+00 : f32
    %20 = vector.broadcast %cst_4 : f32 to vector<32x128xf32>
    %21 = arith.cmpf olt, %19, %20 : vector<32x128xf32>
    %cst_5 = arith.constant 5.000000e-01 : f32
    %22 = vector.broadcast %cst_5 : f32 to vector<32x128xf32>
    %23 = arith.mulf %22, %18 : vector<32x128xf32>
    %24 = arith.mulf %23, %18 : vector<32x128xf32>
    %cst_6 = arith.constant 5.000000e-01 : f32
    %25 = vector.broadcast %cst_6 : f32 to vector<32x128xf32>
    %26 = arith.subf %19, %25 : vector<32x128xf32>
    %27 = arith.select %21, %24, %26 : vector<32x128xi1>, vector<32x128xf32>
    %c0_7 = arith.constant 0 : index
    %c0_8 = arith.constant 0 : index
    %28 = vector.load %arg4[%c0_7, %c0_8] : memref<32x128xf32, #tpu.memory_space<vmem>>, vector<32x128xf32>
    %cst_9 = arith.constant 0.000000e+00 : f32
    %29 = vector.broadcast %cst_9 : f32 to vector<32x128xf32>
    %30 = arith.select %17, %27, %29 : vector<32x128xi1>, vector<32x128xf32>
    %31 = arith.addf %28, %30 : vector<32x128xf32>
    %c0_10 = arith.constant 0 : index
    %c0_11 = arith.constant 0 : index
    %32 = vector.load %arg4[%c0_10, %c0_11] : memref<32x128xf32, #tpu.memory_space<vmem>>, vector<32x128xf32>
    tpu.vector_store %arg4[%c0_10, %c0_11], %31 {strides = array<i32>} : memref<32x128xf32, #tpu.memory_space<vmem>>, vector<32x128xf32>,
    %c0_12 = arith.constant 0 : index
    %c0_13 = arith.constant 0 : index
    %33 = vector.load %arg5[%c0_12, %c0_13] : memref<32x128xf32, #tpu.memory_space<vmem>>, vector<32x128xf32>
    %cst_14 = arith.constant 1.000000e+00 : f32
    %cst_15 = arith.constant 0.000000e+00 : f32
    %34 = vector.broadcast %cst_14 : f32 to vector<32x128xf32>
    %35 = vector.broadcast %cst_15 : f32 to vector<32x128xf32>
    %36 = arith.select %17, %34, %35 : vector<32x128xi1>, vector<32x128xf32>
    %37 = arith.addf %33, %36 : vector<32x128xf32>
    %c0_16 = arith.constant 0 : index
    %c0_17 = arith.constant 0 : index
    %38 = vector.load %arg5[%c0_16, %c0_17] : memref<32x128xf32, #tpu.memory_space<vmem>>, vector<32x128xf32>
    tpu.vector_store %arg5[%c0_16, %c0_17], %37 {strides = array<i32>} : memref<32x128xf32, #tpu.memory_space<vmem>>, vector<32x128xf32>,
    %c0_i32_18 = arith.constant 0 : i32
    %39 = arith.cmpi eq, %arg0, %c0_i32_18 : i32
    %40 = arith.extui %39 : i1 to i32
    %c0_i32_19 = arith.constant 0 : i32
    %41 = arith.cmpi ne, %40, %c0_i32_19 : i32
    scf.if %41 {
      %c0_20 = arith.constant 0 : index
      %c0_21 = arith.constant 0 : index
      %42 = vector.load %arg4[%c0_20, %c0_21] : memref<32x128xf32, #tpu.memory_space<vmem>>, vector<32x128xf32>
      %43 = vector.shape_cast %42 : vector<32x128xf32> to vector<1x32x128xf32>
      %cst_22 = arith.constant dense<0.000000e+00> : vector<1xf32>
      %44 = vector.multi_reduction <add>, %43, %cst_22 [1, 2] : vector<1x32x128xf32> to vector<1xf32>
      %45 = vector.shape_cast %44 : vector<1xf32> to vector<1x1x1xf32>
      %46 = vector.extract %45[0, 0, 0] : f32 from vector<1x1x1xf32>
      %c0_23 = arith.constant 0 : index
      %c0_24 = arith.constant 0 : index
      %47 = vector.load %arg5[%c0_23, %c0_24] : memref<32x128xf32, #tpu.memory_space<vmem>>, vector<32x128xf32>
      %48 = vector.shape_cast %47 : vector<32x128xf32> to vector<1x32x128xf32>
      %cst_25 = arith.constant dense<0.000000e+00> : vector<1xf32>
      %49 = vector.multi_reduction <add>, %48, %cst_25 [1, 2] : vector<1x32x128xf32> to vector<1xf32>
      %50 = vector.shape_cast %49 : vector<1xf32> to vector<1x1x1xf32>
      %51 = vector.extract %50[0, 0, 0] : f32 from vector<1x1x1xf32>
      %52 = arith.divf %46, %51 : f32
      %c0_26 = arith.constant 0 : index
      %c0_27 = arith.constant 0 : index
      %53 = memref.load %arg3[%c0_26, %c0_27] : memref<1x1xf32, #tpu.memory_space<smem>>
      memref.store %52, %arg3[%c0_26, %c0_27] : memref<1x1xf32, #tpu.memory_space<smem>>
    } else {
    }
    return
  }
  func.func @transform_0(%arg0: i32) -> (i32, i32) {
    %c0_i32 = arith.constant 0 : i32
    %c0_i32_0 = arith.constant 0 : i32
    return %arg0, %c0_i32 : i32, i32
  }
  func.func @transform_1(%arg0: i32) -> (i32, i32) {
    %c0_i32 = arith.constant 0 : i32
    %c0_i32_0 = arith.constant 0 : i32
    return %arg0, %c0_i32 : i32, i32
  }
  func.func @transform_2(%arg0: i32) -> (i32, i32) {
    %c0_i32 = arith.constant 0 : i32
    %c0_i32_0 = arith.constant 0 : i32
    %c0_i32_1 = arith.constant 0 : i32
    return %c0_i32, %c0_i32_0 : i32, i32
  }
}

</mosaic_0001>

<bundles_post_ra>
// kernel: tpu_custom_call.1
= control target key start
LH: loop header
LB: loop body
LE: loop exit
PB: predicated region body
PF: predicated region fallthrough
CT: control target
= control target key end

     0   :  { %7 = vsyncpa [#allocation5], 0  ;;  %s388_s0 = inlined_call_operand.hbm [shape: f32[4,128], index: 0, kind: input, shape index: {}]   ;;  %s389_s1 = inlined_call_operand.hbm [shape: f32[4,128], index: 1, kind: input, shape index: {}]   ;;  %s390_s2 = inlined_call_operand.hbm [shape: f32[1,1], index: 2, kind: output, shape index: {}]  }
   0x1   :  { %8 = vsyncpa [#allocation8], 0 }
   0x2   :  { %9 = vsyncpa [#allocation6], 0 }
   0x3   :  { %14 = vsyncadd [#allocation5], 448  ;;  %s287_s9 = smov [#allocation4]   ;;  %s227_s13 = scalar_lea.hbm %s388_s0, 64 }
   0x4   :  { %s15_s10 = sshll.u32 %s287_s9, 4  ;;  %p228_p0 = scmp.ne.s32.totalorder %s388_s0, %s227_s13  ;;  %s16_s10 = int_to_ptr.vmem [resolvable:$true] %s15_s10 }
   0x5   :  { %p231_p1 = scmp.lt.u32.totalorder %s227_s13, %s388_s0 }
   0x7   :  { %p233_p2 = pnand %p231_p1, %p228_p0 }
   0x9   :  { %236 = shalt.err (!%p233_p2)
}
   0xa   :  { %s237_s18 = scalar_lea.vmem %s16_s10, 64  ;;  %s241_s19 = scalar_lea.vmem %s16_s10, 512 }
   0xb   :  { %p238_p3 = scmp.ne.s32.totalorder %s16_s10, %s237_s18  ;;  %p242_p4 = scmp.lt.s32.totalorder %s16_s10, %s16_s10 }
   0xc   :  { %p243_p5 = scmp.lt.s32.totalorder %s241_s19, %s237_s18 }
   0xe   :  { %p244_p6 = por %p243_p5, %p242_p4 }
  0x10   :  { %p245_p7 = pnand %p244_p6, %p238_p3 }
  0x12   :  { %248 = shalt.err (!%p245_p7)
}
  0x13   :  { %s288_s20 = smov 64   ;;  %s289_s21 = smov 4  }
  0x14   :  { %21 = dma.hbm_to_vmem [thread:$0]  %s388_s0, 64, %s16_s10, [#allocation5], %s288_s20, %s288_s20, %s289_s21  }
  0x15   :  { %26 = vsyncadd [#allocation8], 448  ;;  %s290_s24 = smov [#allocation7]   ;;  %s249_s28 = scalar_lea.hbm %s389_s1, 64 }
  0x16   :  { %s27_s25 = sshll.u32 %s290_s24, 4  ;;  %p250_p8 = scmp.ne.s32.totalorder %s389_s1, %s249_s28  ;;  %s28_s25 = int_to_ptr.vmem [resolvable:$true] %s27_s25 }
  0x17   :  { %p253_p9 = scmp.lt.u32.totalorder %s249_s28, %s389_s1 }
  0x19   :  { %p255_p10 = pnand %p253_p9, %p250_p8 }
  0x1b   :  { %258 = shalt.err (!%p255_p10)
}
  0x1c   :  { %s259_s5 = scalar_lea.vmem %s28_s25, 64  ;;  %s263_s0 = scalar_lea.vmem %s28_s25, 512 }
  0x1d   :  { %p260_p11 = scmp.ne.s32.totalorder %s28_s25, %s259_s5  ;;  %p264_p12 = scmp.lt.s32.totalorder %s28_s25, %s28_s25 }
  0x1e   :  { %p265_p13 = scmp.lt.s32.totalorder %s263_s0, %s259_s5 }
  0x20   :  { %p266_p0 = por %p265_p13, %p264_p12 }
  0x22   :  { %p267_p1 = pnand %p266_p0, %p260_p11 }
  0x24   :  { %270 = shalt.err (!%p267_p1)
}
  0x25   :  { %33 = dma.hbm_to_vmem [thread:$0]  %s389_s1, 64, %s28_s25, [#allocation8], %s288_s20, %s288_s20, %s289_s21  }
  0x26   :  { %281 = dma.done.wait [#allocation5], 512  }
  0x27   :  { %282 = vsyncadd [#allocation5], 4294966784 }
  0x28   :  { %283 = dma.done.wait [#allocation8], 512  }
  0x29   :  { %284 = vsyncadd [#allocation8], 4294966784  ;;  %v65_v0 = vlaneseq  ;;  %v52_v10 = vld [vmem:[#allocation4] sm:$0xff]  ;;  %v53_v11 = vld [vmem:[#allocation4 + $0x8] sm:$0xff]  ;;  %v291_v30 = vmov 0.0   ;;  %s271_s13 = scalar_lea.hbm %s390_s2, 16 }
  0x2a   :  { %v54_v12 = vld [vmem:[#allocation4 + $0x10] sm:$0xff]  ;;  %v55_v14 = vld [vmem:[#allocation4 + $0x18] sm:$0xff]  ;;  %v56_v15 = vld [vmem:[#allocation7] sm:$0xff]  ;;  %p272_p2 = scmp.ne.s32.totalorder %s390_s2, %s271_s13  ;;  %p275_p3 = scmp.lt.u32.totalorder %s271_s13, %s390_s2 }
  0x2b   :  { %v66_v1 = vshrl.u32 %v65_v0, 7  ;;  %v76_v2 = vand.u32 127, %v65_v0  ;;  %v57_v16 = vld [vmem:[#allocation7 + $0x8] sm:$0xff]  ;;  %v58_v19 = vld [vmem:[#allocation7 + $0x10] sm:$0xff]  ;;  %v59_v20 = vld [vmem:[#allocation7 + $0x18] sm:$0xff]  ;;  %vm60_vm1 = vcmp.gt.f32.partialorder %v56_v15, 0.0  ;;  %v93_v22 = vsub.f32 %v52_v10, %v56_v15 }
  0x2c   :  { %vm61_vm2 = vcmp.gt.f32.partialorder %v57_v16, 0.0  ;;  %vm62_vm3 = vcmp.gt.f32.partialorder %v58_v19, 0.0  ;;  %vm63_vm4 = vcmp.gt.f32.partialorder %v59_v20, 0.0  ;;  %v94_v25 = vsub.f32 %v53_v11, %v57_v16  ;;  %p277_p4 = pnand %p275_p3, %p272_p2 }
  0x2d   :  { %v67_v3 = vadd.s32 8, %v66_v1  ;;  %v68_v4 = vadd.s32 16, %v66_v1  ;;  %v69_v5 = vadd.s32 24, %v66_v1  ;;  %v77_v6 = vmul.u32 128, %v66_v1 }
  0x2e   :  { %v95_v26 = vsub.f32 %v54_v12, %v58_v19  ;;  %v96_v27 = vsub.f32 %v55_v14, %v59_v20  ;;  %v97_v28 = vand.u32 2147483647, %v93_v22  ;;  %v105_v29 = vmul.f32 0.5, %v93_v22 }
  0x2f   :  { %v78_v7 = vmul.u32 128, %v67_v3  ;;  %v79_v8 = vmul.u32 128, %v68_v4  ;;  %v81_v9 = vadd.s32 %v77_v6, %v76_v2  ;;  %v98_v33 = vand.u32 2147483647, %v94_v25 }
  0x30   :  { %v80_v13 = vmul.u32 128, %v69_v5  ;;  %v99_v34 = vand.u32 2147483647, %v95_v26  ;;  %v100_v35 = vand.u32 2147483647, %v96_v27  ;;  %vm344_vm10 = vcmp.lt.f32.partialorder %v97_v28, 1.0 }
  0x31   :  { %v82_v17 = vadd.s32 %v78_v7, %v76_v2  ;;  %v83_v18 = vadd.s32 %v79_v8, %v76_v2  ;;  %vm85_vm0 = vcmp.lt.s32.totalorder %v81_v9, 512  ;;  %v106_v37 = vmul.f32 0.5, %v94_v25 }
  0x32   :  { %v84_v21 = vadd.s32 %v80_v13, %v76_v2  ;;  %vm332_vm7 = vmand %vm60_vm1, %vm85_vm0  ;;  %v107_v38 = vmul.f32 0.5, %v95_v26  ;;  %v108_v39 = vmul.f32 0.5, %v96_v27  ;;  %vm348_vm11 = vcmp.lt.f32.partialorder %v98_v33, 1.0 }
  0x33   :  { %vm86_vm5 = vcmp.lt.s32.totalorder %v82_v17, 512  ;;  %vm87_vm6 = vcmp.lt.s32.totalorder %v83_v18, 512  ;;  %v141_v31 = vsel %vm332_vm7, 1.0, %v291_v30  ;;  %vm352_vm12 = vcmp.lt.f32.partialorder %v99_v34, 1.0 }
  0x34   :  { %vm88_vm8 = vcmp.lt.s32.totalorder %v84_v21, 512  ;;  %vm336_vm9 = vmand %vm61_vm2, %vm86_vm5  ;;  %vm356_vm13 = vcmp.lt.f32.partialorder %v100_v35, 1.0  ;;  %v109_v43 = vmul.f32 %v105_v29, %v93_v22  ;;  %v110_v44 = vmul.f32 %v106_v37, %v94_v25 }
  0x35   :  { %v142_v32 = vsel %vm336_vm9, 1.0, %v291_v30  ;;  %v111_v45 = vmul.f32 %v107_v38, %v95_v26  ;;  %v112_v46 = vmul.f32 %v108_v39, %v96_v27  ;;  %v209_v47 = vadd.f32 -0.5, %v97_v28  ;;  %vm91_vm14 = vmand %vm62_vm3, %vm87_vm6 }
  0x36   :  { %v210_v48 = vadd.f32 -0.5, %v98_v33  ;;  %v211_v49 = vadd.f32 -0.5, %v99_v34  ;;  %v212_v50 = vadd.f32 -0.5, %v100_v35  ;;  %v176_v52 = vadd.f32 %v142_v32, %v141_v31  ;;  %vm92_vm15 = vmand %vm63_vm4, %vm88_vm8 }
  0x37   :  { %v117_v51 = vsel %vm344_vm10, %v109_v43, %v209_v47  ;;  %v143_v59 = vsel %vm91_vm14, 1.0, %v291_v30  ;;  %v144_v0 = vsel %vm92_vm15, 1.0, %v291_v30 }
  0x38   :  { %v118_v53 = vsel %vm348_vm11, %v110_v44, %v210_v48  ;;  %v119_v54 = vsel %vm352_vm12, %v111_v45, %v211_v49  ;;  %v120_v55 = vsel %vm356_vm13, %v112_v46, %v212_v50  ;;  %v125_v56 = vsel %vm332_vm7, %v117_v51, 0.0 }
  0x39   :  { %v126_v57 = vsel %vm336_vm9, %v118_v53, 0.0  ;;  %v127_v58 = vsel %vm91_vm14, %v119_v54, 0.0  ;;  %v128_v61 = vsel %vm92_vm15, %v120_v55, 0.0  ;;  %v177_v63 = vadd.f32 %v176_v52, %v143_v59 }
  0x3a   :  { %v160_v60 = vadd.f32 %v126_v57, %v125_v56 }
  0x3b   :  { %v178_v2 = vadd.f32 %v177_v63, %v144_v0 }
  0x3c   :  { %v161_v62 = vadd.f32 %v160_v60, %v127_v58 }
  0x3e   :  { %v162_v1 = vadd.f32 %v161_v62, %v128_v61 }
  0x40   :  { %163 = vadd.xlane.f32.xlu0 %v162_v1 }
  0x44   :  { %179 = vadd.xlane.f32.xlu0 %v178_v2 }
  0xcd   :  { %v164_v3 = vpop.xlane.xlu0 %163 }
  0xce   :  { %v165_v4 = vrot.slane %v164_v3, 4 }
  0xd0   :  { %v166_v5 = vadd.f32 %v165_v4, %v164_v3 }
  0xd1   :  { %v180_v6 = vpop.xlane.xlu0 %179 }
  0xd2   :  { %v167_v7 = vrot.slane %v166_v5, 2  ;;  %v181_v8 = vrot.slane %v180_v6, 4 }
  0xd4   :  { %v182_v9 = vadd.f32 %v181_v8, %v180_v6  ;;  %v168_v10 = vadd.f32 %v167_v7, %v166_v5 }
  0xd6   :  { %v183_v11 = vrot.slane %v182_v9, 2  ;;  %v169_v12 = vrot.slane %v168_v10, 1 }
  0xd8   :  { %v184_v13 = vadd.f32 %v183_v11, %v182_v9  ;;  %v170_v14 = vadd.f32 %v169_v12, %v168_v10 }
  0xda   :  { %213 = vpush %v170_v14  ;;  %v185_v15 = vrot.slane %v184_v13, 1 }
  0xdc   :  { %v186_v16 = vadd.f32 %v185_v15, %v184_v13 }
  0xde   :  { %215 = vpush %v186_v16 }
 0x10b   :  { %s214_s1 = spop %213 }
 0x10f   :  { %s216_s8 = spop %215 }
 0x110   :  { %v188_v17 = vstv %s216_s8 }
 0x111   :  { %225 = vrcp.f32 %v188_v17 }
 0x11b   :  { %v226_v18 = vpop.eup %225 }
 0x11c   :  { %217 = vpush %v226_v18 }
 0x14d   :  { %s218_s9 = spop %217 }
 0x14e   :  { %s191_s10 = smul.f32 %s218_s9, %s214_s1 }
 0x150   :  { %193 = sst [smem:[#allocation9]] %s191_s10 }
 0x151   :  { %280 = shalt.err (!%p277_p4)
}
 0x152   :  { %s292_s18 = smov [#allocation9]  }
 0x153   :  { %201 = dma.smem_to_hbm %s292_s18, 16, %s390_s2, [#allocation6]  }
 0x154   :  { %285 = dma.done.wait [#allocation6], 16  }
 0x155   :  { %286 = vsyncadd [#allocation6], 4294967280 }
 0x156   :  { %205 = sfence }
 0x157   :  { %206 = vsyncpa [#allocation5], 1 }
 0x158   :  { %207 = vsyncpa [#allocation8], 1 }
 0x159   :  { %208 = vsyncpa [#allocation6], 1 }

</bundles_post_ra>
